<compile_context>
chip_gen: v7x
topology: tpu7x:2x2x1
jax: 0.10.0
libtpu: 0.0.40
codegen_flags: <defaults>
</compile_context>

<pallas_src>
import jax
import jax.numpy as jnp
from jax import lax
from jax.experimental import pallas as pl
from jax.experimental.pallas import tpu as pltpu

_OUT_W = 8  # output lane width (column 0 is the prediction)


def _round_up(x, m):
    return ((x + m - 1) // m) * m


# ----------------------------- Pallas kernels -----------------------------

def _pass1_kernel(slab_ref, w1t_ref, b1_ref, w2d_ref, b2d_ref, mask_ref, s_ref):
    """Accumulate s = mask * (slab^T @ v) over batch tiles (resident accumulator)."""
    i = pl.program_id(0)

    @pl.when(i == 0)
    def _():
        s_ref[...] = jnp.zeros_like(s_ref)

    slab = slab_ref[...]                                                   # (T, 128)
    h = jnp.maximum(
        jnp.dot(slab, w1t_ref[...], preferred_element_type=jnp.float32) + b1_ref[...],
        0.0)                                                               # (T, H)
    v = jnp.dot(h, w2d_ref[...], preferred_element_type=jnp.float32) + b2d_ref[...]
    # partial = slab^T @ v, contracting the batch axis directly (no transpose).
    partial = lax.dot_general(slab, v, (((0,), (0,)), ((), ())),
                              preferred_element_type=jnp.float32)          # (128, Mp)
    s_ref[...] += partial

    @pl.when(i == pl.num_programs(0) - 1)
    def _():
        # keep only the Q_m-row block of column m (static 0/1 mask built in wrapper)
        s_ref[...] = s_ref[...] * mask_ref[...]


def _pass2_kernel(slab_ref, w1t_ref, b1_ref, w2d_ref, b2d_ref, ws_ref, s_ref,
                  out_ref):
    """pred = struct_head + sum_m (v_m - Q_m (Q_m^T v_m)); fully row-parallel."""
    slab = slab_ref[...]                                                   # (T, 128)
    h = jnp.maximum(
        jnp.dot(slab, w1t_ref[...], preferred_element_type=jnp.float32) + b1_ref[...],
        0.0)
    v = jnp.dot(h, w2d_ref[...], preferred_element_type=jnp.float32) + b2d_ref[...]
    # structured head: VPU broadcast-mul + lane reduce (no 1-column matmul).
    pred = jnp.sum(slab * ws_ref[...], axis=-1, keepdims=True)             # (T, 1)
    # ortho correction for every model in one packed matmul: corr[:, m] = Q_m @ s_m.
    corr = jnp.dot(slab, s_ref[...], preferred_element_type=jnp.float32)   # (T, Mp)
    pred = pred + jnp.sum(v - corr, axis=-1, keepdims=True)
    out_ref[...] = jnp.broadcast_to(pred, out_ref.shape)                   # (T, 8)


# ----------------------------- SddrFormulaNet forward -----------------------------

def sddr_formula_net_forward(params, datadict, deep_shapes, ortho_pattern,
                             p=0.1, training=False):
    """Mirrors SddrFormulaNet.forward in eval mode (dropout is identity)."""
    if training and p > 0.0:
        # TODO(synk): training-mode dropout not implemented in the Pallas path.
        raise NotImplementedError("training-mode dropout is not supported")

    X = datadict["structured"].astype(jnp.float32)
    N, S = X.shape

    if not params["deep_models"]:
        # TODO(synk): trivial structured-only path stays in plain XLA.
        return X @ params["structured_head_w"].astype(jnp.float32).T

    wd = params["deep_head_w"].astype(jnp.float32)                         # (1, sum d_out)
    deep_models = params["deep_models"]

    # ---- pack per-row features: [X | x_m ... | Q_m ...] -> (N_pad, F_pad) slab ----
    feat_blocks = [X]
    x_cols, q_cols = {}, {}
    col = S
    for key in deep_models:
        x_m = datadict[key].astype(jnp.float32)
        feat_blocks.append(x_m)
        x_cols[key] = (col, col + x_m.shape[1])
        col += x_m.shape[1]
    for key in deep_models:
        if len(ortho_pattern[key]) > 0:
            xs = jnp.concatenate([X[:, sl] for sl in ortho_pattern[key]], axis=1)
            q, _ = jnp.linalg.qr(xs)          # QR stays in plain JAX/XLA (glue).
            q = q.astype(jnp.float32)
            feat_blocks.append(q)
            q_cols[key] = (col, col + q.shape[1])
            col += q.shape[1]
    F_total = col
    F_pad = _round_up(max(F_total, 1), 128)

    M = len(deep_models)
    Mp = _round_up(M, 128)
    H_total = sum(int(net_p["w1"].shape[0]) for net_p in deep_models.values())
    H_pad = _round_up(max(H_total, 1), 128)

    # ---- pack weights: block-diagonal W1^T, folded (W2^T wd_m^T) columns, mask ----
    w1t_big = jnp.zeros((F_pad, H_pad), jnp.float32)
    b1_all = jnp.zeros((1, H_pad), jnp.float32)
    w2d_all = jnp.zeros((H_pad, Mp), jnp.float32)
    b2d_all = jnp.zeros((1, Mp), jnp.float32)
    mask = jnp.zeros((F_pad, Mp), jnp.float32)
    ws_pad = jnp.zeros((1, F_pad), jnp.float32)
    if S > 0 and "structured_head_w" in params:
        ws_pad = ws_pad.at[:, :S].set(params["structured_head_w"].astype(jnp.float32))

    h_off, out_off = 0, 0
    for m_idx, (key, net_p) in enumerate(deep_models.items()):
        w1 = net_p["w1"].astype(jnp.float32)                               # (h, d_in)
        b1 = net_p["b1"].astype(jnp.float32).reshape(1, -1)                # (1, h)
        w2 = net_p["w2"].astype(jnp.float32)                               # (d_out, h)
        b2 = net_p["b2"].astype(jnp.float32).reshape(1, -1)                # (1, d_out)
        hdim, _ = w1.shape
        d_out = w2.shape[0]
        assert d_out == deep_shapes[key], (key, w2.shape, deep_shapes[key])

        c0, c1 = x_cols[key]
        w1t_big = w1t_big.at[c0:c1, h_off:h_off + hdim].set(w1.T)
        b1_all = b1_all.at[:, h_off:h_off + hdim].set(b1)

        wd_m = wd[:, out_off:out_off + d_out]                              # (1, d_out)
        w2d_all = w2d_all.at[h_off:h_off + hdim, m_idx:m_idx + 1].set(w2.T @ wd_m.T)
        b2d_all = b2d_all.at[:, m_idx:m_idx + 1].set(b2 @ wd_m.T)

        if key in q_cols:
            qc0, qc1 = q_cols[key]
            mask = mask.at[qc0:qc1, m_idx].set(1.0)

        h_off += hdim
        out_off += d_out

    # ---- batch-tiled slab ----
    tile_rows = min(512, _round_up(N, 8))
    N_pad = _round_up(N, tile_rows)
    num_tiles = N_pad // tile_rows
    slab = jnp.concatenate(feat_blocks, axis=1)                            # (N, F_total)
    slab = jnp.pad(slab, ((0, N_pad - N), (0, F_pad - F_total)))

    weight_bytes = 4 * (F_pad * H_pad + H_pad + H_pad * Mp + Mp + F_pad * Mp + F_pad)
    mm_flops = 2 * N_pad * (F_pad * H_pad + H_pad * Mp + F_pad * Mp)
    vmem_limit = 48 * 1024 * 1024

    weight_specs = [
        pl.BlockSpec((F_pad, H_pad), lambda i: (0, 0)),
        pl.BlockSpec((1, H_pad), lambda i: (0, 0)),
        pl.BlockSpec((H_pad, Mp), lambda i: (0, 0)),
        pl.BlockSpec((1, Mp), lambda i: (0, 0)),
    ]
    slab_spec = pl.BlockSpec((tile_rows, F_pad), lambda i: (i, 0))

    # ---- pass 1: accumulate s = mask * (slab^T v) over tiles (reduction axis) ----
    s = pl.pallas_call(
        _pass1_kernel,
        out_shape=jax.ShapeDtypeStruct((F_pad, Mp), jnp.float32),
        grid=(num_tiles,),
        in_specs=[slab_spec] + weight_specs
                 + [pl.BlockSpec((F_pad, Mp), lambda i: (0, 0))],          # mask
        out_specs=pl.BlockSpec((F_pad, Mp), lambda i: (0, 0)),             # resident acc
        compiler_params=pltpu.CompilerParams(
            dimension_semantics=("arbitrary",),
            vmem_limit_bytes=vmem_limit),
        cost_estimate=pl.CostEstimate(
            flops=int(mm_flops), transcendentals=0,
            bytes_accessed=int(4 * N_pad * F_pad + weight_bytes + 4 * F_pad * Mp)),
    )(slab, w1t_big, b1_all, w2d_all, b2d_all, mask)

    # ---- pass 2: apply heads + ortho correction, fully row-parallel ----
    out = pl.pallas_call(
        _pass2_kernel,
        out_shape=jax.ShapeDtypeStruct((N_pad, _OUT_W), jnp.float32),
        grid=(num_tiles,),
        in_specs=[slab_spec] + weight_specs
                 + [pl.BlockSpec((1, F_pad), lambda i: (0, 0)),            # ws_pad
                    pl.BlockSpec((F_pad, Mp), lambda i: (0, 0))],          # s
        out_specs=pl.BlockSpec((tile_rows, _OUT_W), lambda i: (i, 0)),
        compiler_params=pltpu.CompilerParams(
            dimension_semantics=("parallel",),
            vmem_limit_bytes=vmem_limit),
        cost_estimate=pl.CostEstimate(
            flops=int(mm_flops + 2 * N_pad * F_pad), transcendentals=0,
            bytes_accessed=int(4 * N_pad * F_pad + weight_bytes
                               + 4 * F_pad * Mp + 4 * N_pad * _OUT_W)),
    )(slab, w1t_big, b1_all, w2d_all, b2d_all, ws_pad, s)

    return out[:N, :1]                                                     # (N, 1)


# ----------------------------- pure-JAX reference -----------------------------

def _reference(params, datadict, ortho_pattern):
    X = datadict["structured"]
    u_list = []
    for key, pr in params["deep_models"].items():
        h = jnp.maximum(datadict[key] @ pr["w1"].T + pr["b1"], 0.0)
        uhat = h @ pr["w2"].T + pr["b2"]
        if len(ortho_pattern[key]) > 0:
            xs = jnp.concatenate([X[:, sl] for sl in ortho_pattern[key]], axis=1)
            q, _ = jnp.linalg.qr(xs)
            uhat = uhat - q @ (q.T @ uhat)
        u_list.append(uhat)
    utilde = jnp.concatenate(u_list, axis=1)
    return X @ params["structured_head_w"].T + utilde @ params["deep_head_w"].T


# ----------------------------- main -----------------------------

if __name__ == "__main__":
    key = jax.random.PRNGKey(0)
    ks = jax.random.split(key, 12)

    # Small deterministic problem:
    N = 8
    struct_shapes = 6
    deep_shapes = {"dnn1": 4, "dnn2": 3}
    deep_in = {"dnn1": 5, "dnn2": 3}
    deep_hidden = {"dnn1": 16, "dnn2": 8}
    ortho_pattern = {"dnn1": [slice(0, 3), slice(4, 6)], "dnn2": []}

    def mk(k, shape, scale=0.1):
        return (scale * jax.random.normal(k, shape)).astype(jnp.float32)

    params = {
        "deep_models": {
            "dnn1": {
                "w1": mk(ks[0], (deep_hidden["dnn1"], deep_in["dnn1"])),
                "b1": mk(ks[1], (1, deep_hidden["dnn1"])),
                "w2": mk(ks[2], (deep_shapes["dnn1"], deep_hidden["dnn1"])),
                "b2": mk(ks[3], (1, deep_shapes["dnn1"])),
            },
            "dnn2": {
                "w1": mk(ks[4], (deep_hidden["dnn2"], deep_in["dnn2"])),
                "b1": mk(ks[5], (1, deep_hidden["dnn2"])),
                "w2": mk(ks[6], (deep_shapes["dnn2"], deep_hidden["dnn2"])),
                "b2": mk(ks[7], (1, deep_shapes["dnn2"])),
            },
        },
        "structured_head_w": mk(ks[8], (1, struct_shapes)),
        "deep_head_w": mk(ks[9], (1, sum(deep_shapes.values()))),
    }

    datadict = {
        "structured": mk(ks[10], (N, struct_shapes), scale=1.0),
        "dnn1": mk(ks[11], (N, deep_in["dnn1"]), scale=1.0),
        "dnn2": mk(jax.random.fold_in(key, 99), (N, deep_in["dnn2"]), scale=1.0),
    }

    pred = sddr_formula_net_forward(params, datadict, deep_shapes, ortho_pattern,
                                    p=0.05, training=False)
    pred = jax.block_until_ready(pred)

    ref = _reference(params, datadict, ortho_pattern)
    assert pred.shape == (N, 1), pred.shape
    assert jnp.allclose(pred, ref, atol=1e-5, rtol=1e-5), (pred, ref)

    print("KERNEL_OK")
</pallas_src>

<mosaic_0001>
module attributes {stable_mosaic.version = 11 : i64} {
  func.func @_pass1_kernel(%arg0: i32, %arg1: memref<8x128xf32, #tpu.memory_space<vmem>>, %arg2: memref<128x128xf32, #tpu.memory_space<vmem>>, %arg3: memref<1x128xf32, #tpu.memory_space<vmem>>, %arg4: memref<128x128xf32, #tpu.memory_space<vmem>>, %arg5: memref<1x128xf32, #tpu.memory_space<vmem>>, %arg6: memref<128x128xf32, #tpu.memory_space<vmem>>, %arg7: memref<128x128xf32, #tpu.memory_space<vmem>>) attributes {dimension_semantics = [#tpu.dimension_semantics<arbitrary>], iteration_bounds = array<i64: 1>, scalar_prefetch = 0 : i64, scratch_operands = 0 : i64, tpu.core_type = #tpu.core_type<tc>, window_params = [{transform_indices = @transform_0, window_bounds = array<i64: 8, 128>}, {pipeline_mode = #tpu.pipeline_mode<synchronous>, transform_indices = @transform_1, window_bounds = array<i64: 128, 128>}, {pipeline_mode = #tpu.pipeline_mode<synchronous>, transform_indices = @transform_2, window_bounds = array<i64: 1, 128>}, {pipeline_mode = #tpu.pipeline_mode<synchronous>, transform_indices = @transform_3, window_bounds = array<i64: 128, 128>}, {pipeline_mode = #tpu.pipeline_mode<synchronous>, transform_indices = @transform_4, window_bounds = array<i64: 1, 128>}, {pipeline_mode = #tpu.pipeline_mode<synchronous>, transform_indices = @transform_5, window_bounds = array<i64: 128, 128>}, {pipeline_mode = #tpu.pipeline_mode<synchronous>, transform_indices = @transform_6, window_bounds = array<i64: 128, 128>}]} {
    %c0_i32 = arith.constant 0 : i32
    %0 = arith.cmpi eq, %arg0, %c0_i32 : i32
    %1 = arith.extui %0 : i1 to i32
    %c0_i32_0 = arith.constant 0 : i32
    %2 = arith.cmpi ne, %1, %c0_i32_0 : i32
    scf.if %2 {
      %cst_19 = arith.constant 0.000000e+00 : f32
      %23 = vector.broadcast %cst_19 : f32 to vector<128x128xf32>
      %c0_20 = arith.constant 0 : index
      %c0_21 = arith.constant 0 : index
      %24 = vector.load %arg7[%c0_20, %c0_21] : memref<128x128xf32, #tpu.memory_space<vmem>>, vector<128x128xf32>
      tpu.vector_store %arg7[%c0_20, %c0_21], %23 {strides = array<i32>} : memref<128x128xf32, #tpu.memory_space<vmem>>, vector<128x128xf32>,
    } else {
    }
    %c0 = arith.constant 0 : index
    %c0_1 = arith.constant 0 : index
    %3 = vector.load %arg1[%c0, %c0_1] : memref<8x128xf32, #tpu.memory_space<vmem>>, vector<8x128xf32>
    %c0_2 = arith.constant 0 : index
    %c0_3 = arith.constant 0 : index
    %4 = vector.load %arg2[%c0_2, %c0_3] : memref<128x128xf32, #tpu.memory_space<vmem>>, vector<128x128xf32>
    %cst = arith.constant dense<0.000000e+00> : vector<8x128xf32>
    %5 = tpu.matmul %3, %4, %cst {dimension_numbers = #tpu.dot_dimension_numbers<[1], [0], [0], [1], [0, 0, 1, 1], [], []>} : vector<8x128xf32>, vector<128x128xf32>, vector<8x128xf32> -> vector<8x128xf32>
    %c0_4 = arith.constant 0 : index
    %c0_5 = arith.constant 0 : index
    %6 = vector.load %arg3[%c0_4, %c0_5] : memref<1x128xf32, #tpu.memory_space<vmem>>, vector<1x128xf32>
    %7 = vector.broadcast %6 : vector<1x128xf32> to vector<8x128xf32>
    %8 = arith.addf %5, %7 : vector<8x128xf32>
    %cst_6 = arith.constant 0.000000e+00 : f32
    %9 = vector.broadcast %cst_6 : f32 to vector<8x128xf32>
    %10 = arith.maximumf %8, %9 : vector<8x128xf32>
    %c0_7 = arith.constant 0 : index
    %c0_8 = arith.constant 0 : index
    %11 = vector.load %arg4[%c0_7, %c0_8] : memref<128x128xf32, #tpu.memory_space<vmem>>, vector<128x128xf32>
    %cst_9 = arith.constant dense<0.000000e+00> : vector<8x128xf32>
    %12 = tpu.matmul %10, %11, %cst_9 {dimension_numbers = #tpu.dot_dimension_numbers<[1], [0], [0], [1], [0, 0, 1, 1], [], []>} : vector<8x128xf32>, vector<128x128xf32>, vector<8x128xf32> -> vector<8x128xf32>
    %c0_10 = arith.constant 0 : index
    %c0_11 = arith.constant 0 : index
    %13 = vector.load %arg5[%c0_10, %c0_11] : memref<1x128xf32, #tpu.memory_space<vmem>>, vector<1x128xf32>
    %14 = vector.broadcast %13 : vector<1x128xf32> to vector<8x128xf32>
    %15 = arith.addf %12, %14 : vector<8x128xf32>
    %cst_12 = arith.constant dense<0.000000e+00> : vector<128x128xf32>
    %16 = tpu.matmul %3, %15, %cst_12 {dimension_numbers = #tpu.dot_dimension_numbers<[0], [0], [1], [1], [0, 1, 1, 1], [], []>} : vector<8x128xf32>, vector<8x128xf32>, vector<128x128xf32> -> vector<128x128xf32>
    %c0_13 = arith.constant 0 : index
    %c0_14 = arith.constant 0 : index
    %17 = vector.load %arg7[%c0_13, %c0_14] : memref<128x128xf32, #tpu.memory_space<vmem>>, vector<128x128xf32>
    %18 = arith.addf %17, %16 : vector<128x128xf32>
    %c0_15 = arith.constant 0 : index
    %c0_16 = arith.constant 0 : index
    %19 = vector.load %arg7[%c0_15, %c0_16] : memref<128x128xf32, #tpu.memory_space<vmem>>, vector<128x128xf32>
    tpu.vector_store %arg7[%c0_15, %c0_16], %18 {strides = array<i32>} : memref<128x128xf32, #tpu.memory_space<vmem>>, vector<128x128xf32>,
    %c0_i32_17 = arith.constant 0 : i32
    %20 = arith.cmpi eq, %arg0, %c0_i32_17 : i32
    %21 = arith.extui %20 : i1 to i32
    %c0_i32_18 = arith.constant 0 : i32
    %22 = arith.cmpi ne, %21, %c0_i32_18 : i32
    scf.if %22 {
      %c0_19 = arith.constant 0 : index
      %c0_20 = arith.constant 0 : index
      %23 = vector.load %arg7[%c0_19, %c0_20] : memref<128x128xf32, #tpu.memory_space<vmem>>, vector<128x128xf32>
      %c0_21 = arith.constant 0 : index
      %c0_22 = arith.constant 0 : index
      %24 = vector.load %arg6[%c0_21, %c0_22] : memref<128x128xf32, #tpu.memory_space<vmem>>, vector<128x128xf32>
      %25 = arith.mulf %23, %24 : vector<128x128xf32>
      %c0_23 = arith.constant 0 : index
      %c0_24 = arith.constant 0 : index
      %26 = vector.load %arg7[%c0_23, %c0_24] : memref<128x128xf32, #tpu.memory_space<vmem>>, vector<128x128xf32>
      tpu.vector_store %arg7[%c0_23, %c0_24], %25 {strides = array<i32>} : memref<128x128xf32, #tpu.memory_space<vmem>>, vector<128x128xf32>,
    } else {
    }
    return
  }
  func.func @transform_0(%arg0: i32) -> (i32, i32) {
    %c0_i32 = arith.constant 0 : i32
    %c0_i32_0 = arith.constant 0 : i32
    return %arg0, %c0_i32 : i32, i32
  }
  func.func @transform_1(%arg0: i32) -> (i32, i32) {
    %c0_i32 = arith.constant 0 : i32
    %c0_i32_0 = arith.constant 0 : i32
    %c0_i32_1 = arith.constant 0 : i32
    return %c0_i32, %c0_i32_0 : i32, i32
  }
  func.func @transform_2(%arg0: i32) -> (i32, i32) {
    %c0_i32 = arith.constant 0 : i32
    %c0_i32_0 = arith.constant 0 : i32
    %c0_i32_1 = arith.constant 0 : i32
    return %c0_i32, %c0_i32_0 : i32, i32
  }
  func.func @transform_3(%arg0: i32) -> (i32, i32) {
    %c0_i32 = arith.constant 0 : i32
    %c0_i32_0 = arith.constant 0 : i32
    %c0_i32_1 = arith.constant 0 : i32
    return %c0_i32, %c0_i32_0 : i32, i32
  }
  func.func @transform_4(%arg0: i32) -> (i32, i32) {
    %c0_i32 = arith.constant 0 : i32
    %c0_i32_0 = arith.constant 0 : i32
    %c0_i32_1 = arith.constant 0 : i32
    return %c0_i32, %c0_i32_0 : i32, i32
  }
  func.func @transform_5(%arg0: i32) -> (i32, i32) {
    %c0_i32 = arith.constant 0 : i32
    %c0_i32_0 = arith.constant 0 : i32
    %c0_i32_1 = arith.constant 0 : i32
    return %c0_i32, %c0_i32_0 : i32, i32
  }
  func.func @transform_6(%arg0: i32) -> (i32, i32) {
    %c0_i32 = arith.constant 0 : i32
    %c0_i32_0 = arith.constant 0 : i32
    %c0_i32_1 = arith.constant 0 : i32
    return %c0_i32, %c0_i32_0 : i32, i32
  }
}

</mosaic_0001>

<bundles_post_ra>
// kernel: tpu_custom_call.1
= control target key start
LH: loop header
LB: loop body
LE: loop exit
PB: predicated region body
PF: predicated region fallthrough
CT: control target
= control target key end

     0   :  { %11 = vsyncpa [#allocation3], 0  ;;  %s1147_s0 = inlined_call_operand.hbm [shape: f32[8,128], index: 0, kind: input, shape index: {}]   ;;  %s1148_s1 = inlined_call_operand.hbm [shape: f32[128,128], index: 1, kind: input, shape index: {}]   ;;  %s1149_s2 = inlined_call_operand.vmem [shape: f32[1,128], index: 2, kind: input, shape index: {}]   ;;  %s1150_s3 = inlined_call_operand.hbm [shape: f32[128,128], index: 3, kind: input, shape index: {}]   ;;  %s1151_s4 = inlined_call_operand.vmem [shape: f32[1,128], index: 4, kind: input, shape index: {}]   ;;  %s1152_s5 = inlined_call_operand.hbm [shape: f32[128,128], index: 5, kind: input, shape index: {}]   ;;  %s1153_s6 = inlined_call_operand.hbm [shape: f32[128,128], index: 6, kind: output, shape index: {}]  }
   0x1   :  { %12 = vsyncpa [#allocation6], 0 }
   0x2   :  { %13 = vsyncpa [#allocation9], 0 }
   0x3   :  { %14 = vsyncpa [#allocation4], 0  ;;  %s988_s21 = smov [#allocation5]   ;;  %s870_s25 = scalar_lea.hbm %s1148_s1, 2048 }
   0x4   :  { %s30_s22 = sshll.u32 %s988_s21, 4  ;;  %p871_p0 = scmp.ne.s32.totalorder %s1148_s1, %s870_s25  ;;  %s31_s22 = int_to_ptr.vmem [resolvable:$true] %s30_s22 }
   0x5   :  { %p874_p1 = scmp.lt.u32.totalorder %s870_s25, %s1148_s1 }
   0x7   :  { %p876_p2 = pnand %p874_p1, %p871_p0 }
   0x9   :  { %879 = shalt.err (!%p876_p2)
}
   0xa   :  { %s880_s30 = scalar_lea.vmem %s31_s22, 2048  ;;  %p885_p4 = scmp.lt.s32.totalorder %s31_s22, %s31_s22 }
   0xb   :  { %p881_p3 = scmp.ne.s32.totalorder %s31_s22, %s880_s30  ;;  %p886_p5 = scmp.lt.s32.totalorder %s880_s30, %s880_s30 }
   0xd   :  { %p887_p6 = por %p886_p5, %p885_p4 }
   0xf   :  { %p888_p7 = pnand %p887_p6, %p881_p3 }
  0x11   :  { %891 = shalt.err (!%p888_p7)
}
  0x12   :  { %s989_s7 = smov 128   ;;  %s990_s8 = smov 8  }
  0x13   :  { %36 = dma.hbm_to_vmem [thread:$0]  %s1148_s1, 2048, %s31_s22, [#allocation6], %s989_s7, %s989_s7, %s990_s8  }
  0x14   :  { %s991_s11 = smov [#allocation2]   ;;  %s992_s13 = smov [#allocation7]  }
  0x15   :  { %s21_s12 = sshll.u32 %s991_s11, 4  ;;  %s44_s14 = sshll.u32 %s992_s13, 4  ;;  %s22_s12 = int_to_ptr.vmem [resolvable:$true] %s21_s12  ;;  %s45_s14 = int_to_ptr.vmem [resolvable:$true] %s44_s14 }
  0x16   :  { %s892_s17 = scalar_lea.hbm %s1147_s0, 128 }
  0x17   :  { %p893_p8 = scmp.ne.s32.totalorder %s1147_s0, %s892_s17  ;;  %p896_p9 = scmp.lt.u32.totalorder %s892_s17, %s1147_s0 }
  0x19   :  { %p898_p10 = pnand %p896_p9, %p893_p8 }
  0x1b   :  { %901 = shalt.err (!%p898_p10)
}
  0x1c   :  { %s902_s1 = scalar_lea.vmem %s22_s12, 128  ;;  %p907_p12 = scmp.lt.s32.totalorder %s22_s12, %s22_s12 }
  0x1d   :  { %p903_p11 = scmp.ne.s32.totalorder %s22_s12, %s902_s1  ;;  %p908_p13 = scmp.lt.s32.totalorder %s902_s1, %s902_s1 }
  0x1f   :  { %p909_p0 = por %p908_p13, %p907_p12 }
  0x21   :  { %p910_p1 = pnand %p909_p0, %p903_p11 }
  0x23   :  { %913 = shalt.err (!%p910_p1)
}
  0x24   :  { %24 = dma.hbm_to_vmem [thread:$0]  %s1147_s0, 128, %s22_s12, [#allocation3]  }
  0x25   :  { %s914_s26 = scalar_lea.hbm %s1150_s3, 2048 }
  0x26   :  { %p915_p2 = scmp.ne.s32.totalorder %s1150_s3, %s914_s26  ;;  %p918_p3 = scmp.lt.u32.totalorder %s914_s26, %s1150_s3 }
  0x28   :  { %p920_p4 = pnand %p918_p3, %p915_p2 }
  0x2a   :  { %923 = shalt.err (!%p920_p4)
}
  0x2b   :  { %s924_s9 = scalar_lea.vmem %s45_s14, 2048  ;;  %p929_p6 = scmp.lt.s32.totalorder %s45_s14, %s45_s14 }
  0x2c   :  { %p925_p5 = scmp.ne.s32.totalorder %s45_s14, %s924_s9  ;;  %p930_p7 = scmp.lt.s32.totalorder %s924_s9, %s924_s9 }
  0x2e   :  { %p931_p8 = por %p930_p7, %p929_p6 }
  0x30   :  { %p932_p9 = pnand %p931_p8, %p925_p5 }
  0x32   :  { %935 = shalt.err (!%p932_p9)
}
  0x33   :  { %50 = dma.hbm_to_vmem [thread:$0]  %s1150_s3, 2048, %s45_s14, [#allocation6], %s989_s7, %s989_s7, %s990_s8  }
  0x34   :  { %s993_s11 = smov [#allocation8]   ;;  %s936_s16 = scalar_lea.hbm %s1152_s5, 2048 }
  0x35   :  { %s58_s12 = sshll.u32 %s993_s11, 4  ;;  %p937_p10 = scmp.ne.s32.totalorder %s1152_s5, %s936_s16  ;;  %s59_s12 = int_to_ptr.vmem [resolvable:$true] %s58_s12 }
  0x36   :  { %p940_p11 = scmp.lt.u32.totalorder %s936_s16, %s1152_s5 }
  0x38   :  { %p942_p12 = pnand %p940_p11, %p937_p10 }
  0x3a   :  { %945 = shalt.err (!%p942_p12)
}
  0x3b   :  { %s946_s21 = scalar_lea.vmem %s59_s12, 2048  ;;  %p951_p0 = scmp.lt.s32.totalorder %s59_s12, %s59_s12 }
  0x3c   :  { %p947_p13 = scmp.ne.s32.totalorder %s59_s12, %s946_s21  ;;  %p952_p1 = scmp.lt.s32.totalorder %s946_s21, %s946_s21 }
  0x3e   :  { %p953_p2 = por %p952_p1, %p951_p0 }
  0x40   :  { %p954_p3 = pnand %p953_p2, %p947_p13 }
  0x42   :  { %957 = shalt.err (!%p954_p3)
}
  0x43   :  { %64 = dma.hbm_to_vmem [thread:$0]  %s1152_s5, 2048, %s59_s12, [#allocation9], %s989_s7, %s989_s7, %s990_s8  }
  0x44   :  { %980 = dma.done.wait [#allocation3], 128  }
  0x45   :  { %981 = vsyncadd [#allocation3], 4294967168 }
  0x46   :  { %982 = dma.done.wait [#allocation6], 4096  }
  0x47   :  { %983 = vsyncadd [#allocation6], 4294963200 }
  0x48   :  { %984 = dma.done.wait [#allocation9], 2048  }
  0x49   :  { %985 = vsyncadd [#allocation9], 4294965248  ;;  %v994_v0 = vmov 0.0|0.0   ;;  %vm995_vm0 = vmmov 0   ;;  %v996_v1 = vmov 0.0   ;;  %v98_v2 = vld [vmem:[#allocation5] sm:$0xff] }
  0x4a   :  { %810 = vmatprep.subr.bf16.mxu0 %v994_v0  ;;  %746 = vmatprep.mubr.msk.f32.mxu0 %vm995_vm0, %v996_v1  ;;  %v99_v3 = vld [vmem:[#allocation5 + $0x8] sm:$0xff]  ;;  %v100_v4 = vld [vmem:[#allocation5 + $0x10] sm:$0xff]  ;;  %v101_v6 = vld [vmem:[#allocation5 + $0x18] sm:$0xff]  ;;  %vm317_vm1 = vcmask 64512  }
  0x4b   :  { %834 = vmatprep.subr.bf16.mxu1 %v994_v0  ;;  %781 = vmatprep.mubr.msk.f32.mxu1 %vm995_vm0, %v996_v1  ;;  %v811_v5 = vpack.c.bf16 %v99_v3, %v98_v2  ;;  %v814_v7 = vpack.c.bf16 %v101_v6, %v100_v4  ;;  %v102_v8 = vld [vmem:[#allocation5 + $0x20] sm:$0xff]  ;;  %v103_v9 = vld [vmem:[#allocation5 + $0x28] sm:$0xff]  ;;  %v1093_v10 = vld [vmem:[#allocation2] sm:$0xff] }
  0x4c   :  { %v192_v11 = vld [vmem:[#allocation7] sm:$0xff]  ;;  %v193_v12 = vld [vmem:[#allocation7 + $0x8] sm:$0xff]  ;;  %v194_v13 = vld [vmem:[#allocation7 + $0x10] sm:$0xff]  ;;  %285 = vxpose.xlu0.b32.start.end [1/1] (short) %v1093_v10, 128  ;;  %v817_v15 = vpack.c.bf16 %v103_v9, %v102_v8 }
  0x4d   :  { %812 = vmatpush3.bf16.msra.mxu0 %v811_v5  ;;  %v195_v14 = vld [vmem:[#allocation7 + $0x18] sm:$0xff]  ;;  %v835_v16 = vpack.c.bf16 %v193_v12, %v192_v11  ;;  %v104_v17 = vld [vmem:[#allocation5 + $0x30] sm:$0xff]  ;;  %v196_v20 = vld [vmem:[#allocation7 + $0x20] sm:$0xff] }
  0x4e   :  { %813 = vmatprep.subr.bf16.mxu0 %v994_v0  ;;  %v105_v18 = vld [vmem:[#allocation5 + $0x38] sm:$0xff]  ;;  %v838_v19 = vpack.c.bf16 %v195_v14, %v194_v13  ;;  %v197_v21 = vld [vmem:[#allocation7 + $0x28] sm:$0xff]  ;;  %v106_v23 = vld [vmem:[#allocation5 + $0x40] sm:$0xff] }
  0x4f   :  { %836 = vmatpush3.bf16.msra.mxu1 %v835_v16  ;;  %v820_v22 = vpack.c.bf16 %v105_v18, %v104_v17  ;;  %v107_v24 = vld [vmem:[#allocation5 + $0x48] sm:$0xff]  ;;  %v841_v25 = vpack.c.bf16 %v197_v21, %v196_v20  ;;  %v198_v26 = vld [vmem:[#allocation7 + $0x30] sm:$0xff]  ;;  %v199_v27 = vld [vmem:[#allocation7 + $0x38] sm:$0xff] }
  0x50   :  { %837 = vmatprep.subr.bf16.mxu1 %v994_v0  ;;  %v823_v28 = vpack.c.bf16 %v107_v24, %v106_v23  ;;  %v108_v29 = vld [vmem:[#allocation5 + $0x50] sm:$0xff]  ;;  %v109_v30 = vld [vmem:[#allocation5 + $0x58] sm:$0xff]  ;;  %v844_v31 = vpack.c.bf16 %v199_v27, %v198_v26  ;;  %v200_v32 = vld [vmem:[#allocation7 + $0x40] sm:$0xff] }
  0x51   :  { %815 = vmatpush3.bf16.msra.mxu0 %v814_v7  ;;  %v201_v33 = vld [vmem:[#allocation7 + $0x48] sm:$0xff]  ;;  %v826_v34 = vpack.c.bf16 %v109_v30, %v108_v29  ;;  %v110_v35 = vld [vmem:[#allocation5 + $0x60] sm:$0xff]  ;;  %v202_v38 = vld [vmem:[#allocation7 + $0x50] sm:$0xff] }
  0x52   :  { %816 = vmatprep.subr.bf16.mxu0 %v994_v0  ;;  %v111_v36 = vld [vmem:[#allocation5 + $0x68] sm:$0xff]  ;;  %v847_v37 = vpack.c.bf16 %v201_v33, %v200_v32  ;;  %v203_v39 = vld [vmem:[#allocation7 + $0x58] sm:$0xff]  ;;  %v112_v41 = vld [vmem:[#allocation5 + $0x70] sm:$0xff] }
  0x53   :  { %839 = vmatpush3.bf16.msra.mxu1 %v838_v19  ;;  %v829_v40 = vpack.c.bf16 %v111_v36, %v110_v35  ;;  %v113_v42 = vld [vmem:[#allocation5 + $0x78] sm:$0xff]  ;;  %v850_v43 = vpack.c.bf16 %v203_v39, %v202_v38  ;;  %v204_v44 = vld [vmem:[#allocation7 + $0x60] sm:$0xff]  ;;  %v205_v45 = vld [vmem:[#allocation7 + $0x68] sm:$0xff] }
  0x54   :  { %840 = vmatprep.subr.bf16.mxu1 %v994_v0  ;;  %v832_v46 = vpack.c.bf16 %v113_v42, %v112_v41  ;;  %v853_v47 = vpack.c.bf16 %v205_v45, %v204_v44  ;;  %v206_v48 = vld [vmem:[#allocation7 + $0x70] sm:$0xff]  ;;  %v207_v49 = vld [vmem:[#allocation7 + $0x78] sm:$0xff]  ;;  %v579_v13 = vld [vmem:[#allocation8 + $0x8] sm:$0xff] }
  0x55   :  { %818 = vmatpush3.bf16.msra.mxu0 %v817_v15  ;;  %v856_v50 = vpack.c.bf16 %v207_v49, %v206_v48  ;;  %v645_v59 = vld [vmem:[%s1149_s2] ss:$0 sm:$0xff]  ;;  %v587_v15 = vld [vmem:[#allocation8 + $0x48] sm:$0xff]  ;;  %v578_v17 = vld [vmem:[#allocation8] sm:$0xff]  ;;  %s997_s2 = smov [#allocation10]  }
  0x56   :  { %819 = vmatprep.subr.bf16.mxu0 %v994_v0  ;;  %v646_v5 = vld [vmem:[%s1151_s4] ss:$0 sm:$0xff]  ;;  %v586_v19 = vld [vmem:[#allocation8 + $0x40] sm:$0xff]  ;;  %v580_v29 = vld [vmem:[#allocation8 + $0x10] sm:$0xff]  ;;  %s631_s4 = sshll.u32 %s997_s2, 4  ;;  %s632_s4 = int_to_ptr.vmem [resolvable:$true] %s631_s4 }
  0x57   :  { %842 = vmatpush3.bf16.msra.mxu1 %v841_v25  ;;  %v581_v25 = vld [vmem:[#allocation8 + $0x18] sm:$0xff]  ;;  %v591_v39 = vld [vmem:[#allocation8 + $0x68] sm:$0xff]  ;;  %v582_v41 = vld [vmem:[#allocation8 + $0x20] sm:$0xff]  ;;  %s958_s24 = scalar_lea.vmem %s632_s4, 2048  ;;  %p963_p5 = scmp.lt.s32.totalorder %s632_s4, %s632_s4 }
  0x58   :  { %843 = vmatprep.subr.bf16.mxu1 %v994_v0  ;;  %v589_v27 = vld [vmem:[#allocation8 + $0x58] sm:$0xff]  ;;  %p959_p4 = scmp.ne.s32.totalorder %s632_s4, %s958_s24  ;;  %p964_p6 = scmp.lt.s32.totalorder %s958_s24, %s958_s24 }
  0x59   :  { %821 = vmatpush3.bf16.msra.mxu0 %v820_v22  ;;  %v585_v49 = vld [vmem:[#allocation8 + $0x38] sm:$0xff] }
  0x5a   :  { %822 = vmatprep.subr.bf16.mxu0 %v994_v0  ;;  %p965_p7 = por %p964_p6, %p963_p5 }
  0x5b   :  { %845 = vmatpush3.bf16.msra.mxu1 %v844_v31  ;;  %v588_v31 = vld [vmem:[#allocation8 + $0x50] sm:$0xff] }
  0x5c   :  { %846 = vmatprep.subr.bf16.mxu1 %v994_v0  ;;  %p966_p8 = pnand %p965_p7, %p959_p4 }
  0x5d   :  { %824 = vmatpush3.bf16.msra.mxu0 %v823_v28 }
  0x5e   :  { %825 = vmatprep.subr.bf16.mxu0 %v994_v0 }
  0x5f   :  { %848 = vmatpush3.bf16.msra.mxu1 %v847_v37  ;;  %v583_v37 = vld [vmem:[#allocation8 + $0x28] sm:$0xff] }
  0x60   :  { %849 = vmatprep.subr.bf16.mxu1 %v994_v0 }
  0x61   :  { %827 = vmatpush3.bf16.msra.mxu0 %v826_v34 }
  0x62   :  { %828 = vmatprep.subr.bf16.mxu0 %v994_v0 }
  0x63   :  { %851 = vmatpush3.bf16.msra.mxu1 %v850_v43  ;;  %v590_v43 = vld [vmem:[#allocation8 + $0x60] sm:$0xff] }
  0x64   :  { %852 = vmatprep.subr.bf16.mxu1 %v994_v0 }
  0x65   :  { %830 = vmatpush3.bf16.msra.mxu0 %v829_v40 }
  0x66   :  { %831 = vmatprep.subr.bf16.mxu0 %v994_v0 }
  0x67   :  { %854 = vmatpush3.bf16.msra.mxu1 %v853_v47 }
  0x68   :  { %855 = vmatprep.subr.bf16.mxu1 %v994_v0 }
  0x69   :  { %833 = vmatpush3.bf16.msra.mxu0 %v832_v46 }
  0x6b   :  { %857 = vmatpush3.bf16.msra.mxu1 %v856_v50 }
  0x6c   :  { %747 = vmatmul.mubr.f32.vlgmr.msra.gmra.mrb[0].mxu0 %v1093_v10 }
  0xcc   :  { %v301_v51 = vpop.trf.xlu0 }
  0xcd   :  { %786 = vmatprep.mubr.msk.f32.mxu0 %vm317_vm1, %v301_v51  ;;  %v593_v51 = vld [vmem:[#allocation8 + $0x78] sm:$0xff] }
  0xd0   :  { %v302_v52 = vpop.trf.xlu0 }
  0xd4   :  { %v303_v53 = vpop.trf.xlu0 }
  0xd8   :  { %v304_v54 = vpop.trf.xlu0 }
  0xdc   :  { %v305_v55 = vpop.trf.xlu0 }
  0xe0   :  { %v306_v56 = vpop.trf.xlu0 }
  0xe4   :  { %v307_v57 = vpop.trf.xlu0 }
  0xe8   :  { %v308_v58 = vpop.trf.xlu0 }
  0xec   :  { %v309_v0 = vpop.trf.xlu0 }
  0xf0   :  { %v310_v1 = vpop.trf.xlu0 }
  0xf4   :  { %v311_v2 = vpop.trf.xlu0 }
  0xf8   :  { %v312_v3 = vpop.trf.xlu0 }
  0xfc   :  { %v313_v4 = vpop.trf.xlu0 }
 0x100   :  { %v314_v9 = vpop.trf.xlu0 }
 0x104   :  { %v315_v10 = vpop.trf.xlu0 }
 0x108   :  { %v316_v11 = vpop.trf.xlu0 }
 0x13f   :  { %v187_v60 = vpop.f32.mrb[0].mxu0 }
 0x140   :  { %v188_v61 = vadd.f32 %v645_v59, %v187_v60  ;;  %v748_v62 = vpop.f32.mrb[1].mxu0 }
 0x142   :  { %v191_v63 = vmax.f32 %v188_v61, 0.0 }
 0x144   :  { %782 = vmatmul.mubr.f32.vlgmr.msra.gmra.mrb[0].mxu1 %v191_v63 }
 0x145   :  { %798 = vmatprep.mubr.msk.f32.mxu1 %vm317_vm1, %v309_v0 }
 0x217   :  { %v281_v6 = vpop.f32.mrb[0].mxu1 }
 0x218   :  { %v282_v7 = vadd.f32 %v646_v5, %v281_v6  ;;  %v783_v8 = vpop.f32.mrb[1].mxu1 }
 0x21a   :  { %784 = vmatprep.subr.mxu0 %v282_v7  ;;  %858 = vmatprep.subr.mxu1 %v282_v7 }
 0x21b   :  { %785 = vmatpush3.msra.mxu0 %v282_v7  ;;  %859 = vmatpush3.msra.mxu1 %v282_v7 }
 0x21c   :  { %787 = vmatmul.mubr.msk.f32.vlgmr.msra.gmra.mrb[2].mxu0 %vm317_vm1, %v302_v52  ;;  %799 = vmatmul.mubr.msk.f32.vlgmr.msra.gmra.mrb[2].mxu1 %vm317_vm1, %v310_v1 }
 0x21d   :  { %789 = vmatprep.mubr.msk.f32.mxu0 %vm317_vm1, %v303_v53  ;;  %801 = vmatprep.mubr.msk.f32.mxu1 %vm317_vm1, %v311_v2  ;;  %v584_v53 = vld [vmem:[#allocation8 + $0x30] sm:$0xff] }
 0x220   :  { %790 = vmatmul.mubr.msk.f32.gmra.mrb[4].mxu0 %vm317_vm1, %v304_v54  ;;  %802 = vmatmul.mubr.msk.f32.gmra.mrb[4].mxu1 %vm317_vm1, %v312_v3 }
 0x221   :  { %792 = vmatprep.mubr.msk.f32.mxu0 %vm317_vm1, %v305_v55  ;;  %804 = vmatprep.mubr.msk.f32.mxu1 %vm317_vm1, %v313_v4  ;;  %v592_v55 = vld [vmem:[#allocation8 + $0x70] sm:$0xff] }
 0x224   :  { %793 = vmatmul.mubr.msk.f32.gmra.mrb[6].mxu0 %vm317_vm1, %v306_v56  ;;  %805 = vmatmul.mubr.msk.f32.gmra.mrb[6].mxu1 %vm317_vm1, %v314_v9 }
 0x225   :  { %795 = vmatprep.mubr.msk.f32.mxu0 %vm317_vm1, %v307_v57  ;;  %807 = vmatprep.mubr.msk.f32.mxu1 %vm317_vm1, %v315_v10 }
 0x228   :  { %796 = vmatmul.mubr.msk.f32.gmra.mrb[8].mxu0 %vm317_vm1, %v308_v58  ;;  %808 = vmatmul.mubr.msk.f32.gmra.mrb[8].mxu1 %vm317_vm1, %v316_v11 }
 0x2ef   :  { %v788_v12 = vpop.f32.mrb[2].mxu0  ;;  %v800_v14 = vpop.f32.mrb[2].mxu1 }
 0x2f0   :  { %v432_v16 = vpop.f32.mrb[3].mxu0  ;;  %v472_v18 = vpop.f32.mrb[3].mxu1  ;;  %v595_v20 = vmul.f32 %v788_v12, %v579_v13  ;;  %v603_v21 = vmul.f32 %v800_v14, %v587_v15 }
 0x2f1   :  { %v594_v22 = vmul.f32 %v578_v17, %v432_v16  ;;  %v602_v23 = vmul.f32 %v586_v19, %v472_v18 }
 0x2f2   :  { %611 = vst [vmem:[#allocation10 + $0x8] sm:$0xff] %v595_v20  ;;  %619 = vst [vmem:[#allocation10 + $0x48] sm:$0xff] %v603_v21 }
 0x2f3   :  { %v791_v24 = vpop.f32.mrb[4].mxu0  ;;  %v803_v26 = vpop.f32.mrb[4].mxu1  ;;  %610 = vst [vmem:[#allocation10] sm:$0xff] %v594_v22  ;;  %618 = vst [vmem:[#allocation10 + $0x40] sm:$0xff] %v602_v23 }
 0x2f4   :  { %v442_v28 = vpop.f32.mrb[5].mxu0  ;;  %v482_v30 = vpop.f32.mrb[5].mxu1  ;;  %v597_v32 = vmul.f32 %v791_v24, %v581_v25  ;;  %v605_v33 = vmul.f32 %v803_v26, %v589_v27 }
 0x2f5   :  { %v596_v34 = vmul.f32 %v580_v29, %v442_v28  ;;  %v604_v35 = vmul.f32 %v588_v31, %v482_v30 }
 0x2f6   :  { %613 = vst [vmem:[#allocation10 + $0x18] sm:$0xff] %v597_v32  ;;  %621 = vst [vmem:[#allocation10 + $0x58] sm:$0xff] %v605_v33 }
 0x2f7   :  { %v794_v36 = vpop.f32.mrb[6].mxu0  ;;  %v806_v38 = vpop.f32.mrb[6].mxu1  ;;  %612 = vst [vmem:[#allocation10 + $0x10] sm:$0xff] %v596_v34  ;;  %620 = vst [vmem:[#allocation10 + $0x50] sm:$0xff] %v604_v35 }
 0x2f8   :  { %v452_v40 = vpop.f32.mrb[7].mxu0  ;;  %v492_v42 = vpop.f32.mrb[7].mxu1  ;;  %v599_v44 = vmul.f32 %v794_v36, %v583_v37  ;;  %v607_v45 = vmul.f32 %v806_v38, %v591_v39 }
 0x2f9   :  { %v598_v46 = vmul.f32 %v582_v41, %v452_v40  ;;  %v606_v47 = vmul.f32 %v590_v43, %v492_v42 }
 0x2fa   :  { %615 = vst [vmem:[#allocation10 + $0x28] sm:$0xff] %v599_v44  ;;  %623 = vst [vmem:[#allocation10 + $0x68] sm:$0xff] %v607_v45 }
 0x2fb   :  { %v797_v48 = vpop.f32.mrb[8].mxu0  ;;  %v809_v50 = vpop.f32.mrb[8].mxu1  ;;  %614 = vst [vmem:[#allocation10 + $0x20] sm:$0xff] %v598_v46  ;;  %622 = vst [vmem:[#allocation10 + $0x60] sm:$0xff] %v606_v47 }
 0x2fc   :  { %v462_v52 = vpop.f32.mrb[9].mxu0  ;;  %v502_v54 = vpop.f32.mrb[9].mxu1  ;;  %v601_v56 = vmul.f32 %v797_v48, %v585_v49  ;;  %v609_v57 = vmul.f32 %v809_v50, %v593_v51 }
 0x2fd   :  { %v600_v58 = vmul.f32 %v584_v53, %v462_v52  ;;  %v608_v59 = vmul.f32 %v592_v55, %v502_v54 }
 0x2fe   :  { %617 = vst [vmem:[#allocation10 + $0x38] sm:$0xff] %v601_v56  ;;  %625 = vst [vmem:[#allocation10 + $0x78] sm:$0xff] %v609_v57 }
 0x2ff   :  { %616 = vst [vmem:[#allocation10 + $0x30] sm:$0xff] %v600_v58  ;;  %624 = vst [vmem:[#allocation10 + $0x70] sm:$0xff] %v608_v59 }
 0x300   :  { %969 = shalt.err (!%p966_p8)
}
 0x301   :  { %s970_s27 = scalar_lea.hbm %s1153_s6, 2048 }
 0x302   :  { %p971_p9 = scmp.ne.s32.totalorder %s1153_s6, %s970_s27  ;;  %p974_p10 = scmp.lt.u32.totalorder %s970_s27, %s1153_s6 }
 0x304   :  { %p976_p11 = pnand %p974_p10, %p971_p9 }
 0x306   :  { %979 = shalt.err (!%p976_p11)
}
 0x307   :  { %637 = dma.vmem_to_hbm [thread:$0]  %s632_s4, 2048, %s1153_s6, [#allocation4], %s989_s7, %s989_s7, %s990_s8  }
 0x308   :  { %986 = dma.done.wait [#allocation4], 2048  }
 0x309   :  { %987 = vsyncadd [#allocation4], 4294965248 }
 0x30a   :  { %641 = vsyncpa [#allocation3], 1 }
 0x30b   :  { %642 = vsyncpa [#allocation6], 1 }
 0x30c   :  { %643 = vsyncpa [#allocation9], 1 }
 0x30d   :  { %644 = vsyncpa [#allocation4], 1 }

</bundles_post_ra>
